<compile_context>
chip_gen: v7x
topology: tpu7x:2x2x1
jax: 0.10.0
libtpu: 0.0.40
codegen_flags: <defaults>
</compile_context>

<pallas_src>
import jax
import jax.numpy as jnp
from jax.experimental import pallas as pl
from jax.experimental.pallas import tpu as pltpu


def _round_up(x: int, m: int) -> int:
    return ((x + m - 1) // m) * m


def _padded_bytes_2d(rows: int, cols: int, dtype) -> int:
    """VMEM footprint of a 2-D buffer with (sublane, lane) tile padding."""
    itemsize = jnp.dtype(dtype).itemsize
    sub = (8 * 4) // itemsize            # 8 sublanes for f32, 16 for bf16, 32 for i8
    return _round_up(max(rows, 1), sub) * _round_up(max(cols, 1), 128) * itemsize


def _make_mlp_kernel(num_layers: int, compute_dtype):
    """Fused MLP: (Linear+ReLU) * (num_layers-1) + final Linear(·,1) as a lane-dense reduce."""

    def kernel(*refs):
        # refs = (x, w0, b0, ..., w_{L-2}, b_{L-2}, w_last_row(1,H), b_last(1,1), out(1,TILE_B))
        x_ref = refs[0]
        o_ref = refs[-1]
        params = refs[1:-1]

        x = x_ref[...]  # (TILE_B, state_dim), f32 or bf16
        # Hidden layers: bf16 MXU matmul, f32 accumulate, bias + ReLU in f32.
        for layer in range(num_layers - 1):
            w = params[2 * layer][...]          # (in_l, out_l), compute_dtype
            b = params[2 * layer + 1][...]      # (1, out_l), f32 (broadcasts over batch)
            x = jnp.dot(x.astype(compute_dtype), w,
                        preferred_element_type=jnp.float32) + b
            x = jnp.maximum(x, 0.0)

        # Final layer (out_dim == 1): VPU multiply + cross-lane (XLU) reduce instead of an
        # N=1 MXU pass. Result is written lane-major as a (1, TILE_B) row block so the
        # output writeback is unmasked and dense.
        w_last = params[2 * (num_layers - 1)][...]      # (1, H) f32
        b_last = params[2 * (num_layers - 1) + 1][...]  # (1, 1) f32
        r = jnp.sum(x * w_last, axis=-1)                # (TILE_B,)
        o_ref[...] = r[None, :] + b_last                # (1, TILE_B)

    return kernel


def state_value_forward(state, weights, biases, *, tile_b: int = 4096,
                        compute_dtype=jnp.bfloat16):
    """Pallas forward for StateValue.

    state: (B, state_dim), f32 or bf16 (bf16 halves input HBM traffic; no cast is added).
    weights[l]: (in_l, out_l) == PyTorch weight.T;  biases[l]: (1, out_l).
    Returns (B, 1) f32 state values.
    """
    num_layers = len(weights)
    assert len(biases) == num_layers and num_layers >= 1
    B, state_dim = state.shape
    out_dim = weights[-1].shape[1]
    # The reduction head below is only valid for a scalar value head.
    assert out_dim == 1, "StateValue kernel requires output_layer out_features == 1"

    # Batch tile: multiple of 8 (sublane granularity), capped at tile_b, and chosen so the
    # grid has >=2 steps whenever B allows it (v7x: "parallel" shards steps across 2 TCs).
    tb = min(tile_b, _round_up(pl.cdiv(B, 2), 8), _round_up(B, 8))
    num_tiles = pl.cdiv(B, tb)
    Bp = num_tiles * tb
    if Bp != B:
        state = jnp.pad(state, ((0, Bp - B), (0, 0)))  # rows are independent -> safe

    # Build argument list + specs. Weights/biases get constant index_maps so the
    # pipeline keeps them VMEM-resident across grid steps (no per-step re-copy).
    args = [state]
    in_specs = [pl.BlockSpec((tb, state_dim), lambda i: (i, 0))]

    for l in range(num_layers - 1):
        w = weights[l].astype(compute_dtype)
        b = biases[l].astype(jnp.float32)
        args += [w, b]
        in_specs += [pl.BlockSpec(w.shape, lambda i: (0, 0)),
                     pl.BlockSpec(b.shape, lambda i: (0, 0))]

    # Final layer: pass the weight column as a lane-dense (1, H) row (f32).
    w_last = weights[-1].astype(jnp.float32).reshape(1, -1)
    b_last = biases[-1].astype(jnp.float32).reshape(1, 1)
    args += [w_last, b_last]
    in_specs += [pl.BlockSpec(w_last.shape, lambda i: (0, 0)),
                 pl.BlockSpec(b_last.shape, lambda i: (0, 0))]

    # Lane-dense output: (num_tiles, tb) with one (1, tb) row block per grid step.
    out_spec = pl.BlockSpec((1, tb), lambda i: (i, 0))
    out_shape = jax.ShapeDtypeStruct((num_tiles, tb), jnp.float32)

    # ---- VMEM budget (lane/sublane-padded, double-buffering counted) ----
    widths = [state_dim] + [w.shape[1] for w in weights]
    max_width = max(widths)
    in_tile_bytes = 2 * _padded_bytes_2d(tb, state_dim, state.dtype)      # double-buffered input
    out_tile_bytes = 2 * _padded_bytes_2d(1, tb, jnp.float32)             # double-buffered output row
    param_bytes = sum(2 * _padded_bytes_2d(a.shape[0], a.shape[1], a.dtype)
                      for a in args[1:])                                   # default double-buffered
    act_bytes = 4 * _padded_bytes_2d(tb, max_width, jnp.float32)          # activation temporaries
    est = in_tile_bytes + out_tile_bytes + param_bytes + act_bytes

    # Cap derived from the chip (~half of per-core VMEM); conservative fallback if the
    # query is unavailable (32 MiB is safe on v5e/v6e/v7x).
    try:
        cap = int(pltpu.get_tpu_info().vmem_capacity_bytes) // 2
    except Exception:
        cap = 32 << 20
    vmem_limit = min(max(2 * est, 16 << 20), cap)

    # ---- Cost hint: kernel is tiny and DMA-dominated; let XLA overlap around it ----
    raw_param_bytes = sum(int(a.size) * a.dtype.itemsize for a in args[1:])
    flops = 2 * Bp * sum(int(w.shape[0]) * int(w.shape[1]) for w in weights)
    bytes_accessed = (Bp * state_dim * state.dtype.itemsize   # input
                      + raw_param_bytes                       # weights/biases
                      + Bp * 4)                               # output
    cost = pl.CostEstimate(flops=flops, transcendentals=0,
                           bytes_accessed=int(bytes_accessed))

    out = pl.pallas_call(
        _make_mlp_kernel(num_layers, compute_dtype),
        out_shape=out_shape,
        grid=(num_tiles,),
        in_specs=in_specs,
        out_specs=out_spec,
        compiler_params=pltpu.CompilerParams(
            dimension_semantics=("parallel",),   # shard batch tiles across TCs (v7x)
            vmem_limit_bytes=int(vmem_limit),
        ),
        cost_estimate=cost,
    )(*args)
    # (num_tiles, tb) -> (Bp, 1) -> (B, 1); row i*tb + j is out[i, j].
    return out.reshape(Bp, 1)[:B]


def init_state_value_params(key, state_dim, hidden_dims=(128,)):
    """nn.Linear-style init: U(-1/sqrt(fan_in), 1/sqrt(fan_in)).
    Weights returned as (in, out) = PyTorch weight.T so the kernel does x @ W + b.
    For best TPU mapping keep hidden widths at multiples of 128 (one vreg of lanes)."""
    dims = (state_dim,) + tuple(hidden_dims) + (1,)
    weights, biases = [], []
    for i in range(len(dims) - 1):
        fan_in, fan_out = dims[i], dims[i + 1]
        key, kw, kb = jax.random.split(key, 3)
        bound = 1.0 / jnp.sqrt(jnp.float32(fan_in))
        w = jax.random.uniform(kw, (fan_in, fan_out), jnp.float32, -bound, bound)
        b = jax.random.uniform(kb, (1, fan_out), jnp.float32, -bound, bound)
        weights.append(w)
        biases.append(b)
    return weights, biases


def _reference_forward_f32(state, weights, biases):
    """Pure-f32 reference (PyTorch semantics)."""
    x = state
    n = len(weights)
    for l in range(n):
        x = x @ weights[l] + biases[l]
        if l < n - 1:
            x = jnp.maximum(x, 0.0)
    return x


def _reference_forward_matched(state, weights, biases, compute_dtype=jnp.bfloat16):
    """Reference mirroring the kernel's numerics (bf16 MXU matmul, f32 accumulate)."""
    x = state
    n = len(weights)
    for l in range(n - 1):
        x = jnp.dot(x.astype(compute_dtype), weights[l].astype(compute_dtype),
                    preferred_element_type=jnp.float32) + biases[l]
        x = jnp.maximum(x, 0.0)
    return jnp.sum(x * weights[-1].reshape(1, -1), axis=-1, keepdims=True) \
        + biases[-1].reshape(1, 1)


if __name__ == "__main__":
    key = jax.random.PRNGKey(0)
    batch, state_dim = 8, 16
    hidden_dims = (128,)

    key, kx = jax.random.split(key)
    state = jax.random.normal(kx, (batch, state_dim), jnp.float32)
    weights, biases = init_state_value_params(key, state_dim, hidden_dims)

    # Small-batch run (single grid step).
    out = jax.block_until_ready(state_value_forward(state, weights, biases))
    assert out.shape == (batch, 1), out.shape

    ref_matched = _reference_forward_matched(state, weights, biases)
    ref_f32 = _reference_forward_f32(state, weights, biases)
    assert jnp.allclose(out, ref_matched, atol=1e-3, rtol=1e-3), "mismatch vs. matched-precision ref"
    assert jnp.allclose(out, ref_f32, atol=5e-2, rtol=5e-2), "mismatch vs. f32 ref (bf16 tolerance)"

    # Larger run exercising the multi-step grid + tail-padding + lane-dense output path
    # (B=520 -> tile 264, grid=2, 8 padded rows dropped).
    key, kx2 = jax.random.split(key)
    state_big = jax.random.normal(kx2, (520, state_dim), jnp.float32)
    out_big = jax.block_until_ready(state_value_forward(state_big, weights, biases))
    assert out_big.shape == (520, 1), out_big.shape
    ref_big = _reference_forward_matched(state_big, weights, biases)
    assert jnp.allclose(out_big, ref_big, atol=1e-3, rtol=1e-3), "mismatch on tiled/padded batch"

    # bf16 input path (no wrapper-side cast is added; the kernel consumes bf16 directly).
    out_bf16 = jax.block_until_ready(
        state_value_forward(state_big.astype(jnp.bfloat16), weights, biases))
    assert out_bf16.shape == (520, 1), out_bf16.shape
    assert jnp.allclose(out_bf16, ref_big, atol=5e-2, rtol=5e-2), "mismatch on bf16 input path"

    print("KERNEL_OK")
</pallas_src>

<mosaic_0001>
module attributes {stable_mosaic.version = 11 : i64} {
  func.func @kernel(%arg0: i32, %arg1: memref<8x16xf32, #tpu.memory_space<vmem>>, %arg2: memref<16x128xbf16, #tpu.memory_space<vmem>>, %arg3: memref<1x128xf32, #tpu.memory_space<vmem>>, %arg4: memref<1x128xf32, #tpu.memory_space<vmem>>, %arg5: memref<1x1xf32, #tpu.memory_space<vmem>>, %arg6: memref<1x8xf32, #tpu.memory_space<vmem>>) attributes {dimension_semantics = [#tpu.dimension_semantics<parallel>], iteration_bounds = array<i64: 1>, scalar_prefetch = 0 : i64, scratch_operands = 0 : i64, tpu.core_type = #tpu.core_type<tc>, window_params = [{transform_indices = @transform_0, window_bounds = array<i64: 8, 16>}, {pipeline_mode = #tpu.pipeline_mode<synchronous>, transform_indices = @transform_1, window_bounds = array<i64: 16, 128>}, {pipeline_mode = #tpu.pipeline_mode<synchronous>, transform_indices = @transform_2, window_bounds = array<i64: 1, 128>}, {pipeline_mode = #tpu.pipeline_mode<synchronous>, transform_indices = @transform_3, window_bounds = array<i64: 1, 128>}, {pipeline_mode = #tpu.pipeline_mode<synchronous>, transform_indices = @transform_4, window_bounds = array<i64: 1, 1>}, {transform_indices = @transform_5, window_bounds = array<i64: 1, 8>}]} {
    %c0 = arith.constant 0 : index
    %c0_0 = arith.constant 0 : index
    %0 = vector.load %arg1[%c0, %c0_0] : memref<8x16xf32, #tpu.memory_space<vmem>>, vector<8x16xf32>
    %c0_1 = arith.constant 0 : index
    %c0_2 = arith.constant 0 : index
    %1 = vector.load %arg2[%c0_1, %c0_2] : memref<16x128xbf16, #tpu.memory_space<vmem>>, vector<16x128xbf16>
    %c0_3 = arith.constant 0 : index
    %c0_4 = arith.constant 0 : index
    %2 = vector.load %arg3[%c0_3, %c0_4] : memref<1x128xf32, #tpu.memory_space<vmem>>, vector<1x128xf32>
    %3 = arith.truncf %0 : vector<8x16xf32> to vector<8x16xbf16>
    %cst = arith.constant dense<0.000000e+00> : vector<8x128xf32>
    %4 = tpu.matmul %3, %1, %cst {dimension_numbers = #tpu.dot_dimension_numbers<[1], [0], [0], [1], [0, 0, 1, 1], [], []>} : vector<8x16xbf16>, vector<16x128xbf16>, vector<8x128xf32> -> vector<8x128xf32>
    %5 = vector.broadcast %2 : vector<1x128xf32> to vector<8x128xf32>
    %6 = arith.addf %4, %5 : vector<8x128xf32>
    %cst_5 = arith.constant 0.000000e+00 : f32
    %7 = vector.broadcast %cst_5 : f32 to vector<8x128xf32>
    %8 = arith.maximumf %6, %7 : vector<8x128xf32>
    %c0_6 = arith.constant 0 : index
    %c0_7 = arith.constant 0 : index
    %9 = vector.load %arg4[%c0_6, %c0_7] : memref<1x128xf32, #tpu.memory_space<vmem>>, vector<1x128xf32>
    %c0_8 = arith.constant 0 : index
    %c0_9 = arith.constant 0 : index
    %10 = vector.load %arg5[%c0_8, %c0_9] : memref<1x1xf32, #tpu.memory_space<vmem>>, vector<1x1xf32>
    %11 = vector.broadcast %9 : vector<1x128xf32> to vector<8x128xf32>
    %12 = arith.mulf %8, %11 : vector<8x128xf32>
    %cst_10 = arith.constant dense<0.000000e+00> : vector<8xf32>
    %13 = vector.multi_reduction <add>, %12, %cst_10 [1] : vector<8x128xf32> to vector<8xf32>
    %14 = vector.shape_cast %13 : vector<8xf32> to vector<1x8xf32>
    %15 = vector.broadcast %10 : vector<1x1xf32> to vector<1x8xf32>
    %16 = arith.addf %14, %15 : vector<1x8xf32>
    %c0_11 = arith.constant 0 : index
    %c0_12 = arith.constant 0 : index
    %17 = vector.load %arg6[%c0_11, %c0_12] : memref<1x8xf32, #tpu.memory_space<vmem>>, vector<1x8xf32>
    tpu.vector_store %arg6[%c0_11, %c0_12], %16 {strides = array<i32>} : memref<1x8xf32, #tpu.memory_space<vmem>>, vector<1x8xf32>,
    return
  }
  func.func @transform_0(%arg0: i32) -> (i32, i32) {
    %c0_i32 = arith.constant 0 : i32
    %c0_i32_0 = arith.constant 0 : i32
    return %arg0, %c0_i32 : i32, i32
  }
  func.func @transform_1(%arg0: i32) -> (i32, i32) {
    %c0_i32 = arith.constant 0 : i32
    %c0_i32_0 = arith.constant 0 : i32
    %c0_i32_1 = arith.constant 0 : i32
    return %c0_i32, %c0_i32_0 : i32, i32
  }
  func.func @transform_2(%arg0: i32) -> (i32, i32) {
    %c0_i32 = arith.constant 0 : i32
    %c0_i32_0 = arith.constant 0 : i32
    %c0_i32_1 = arith.constant 0 : i32
    return %c0_i32, %c0_i32_0 : i32, i32
  }
  func.func @transform_3(%arg0: i32) -> (i32, i32) {
    %c0_i32 = arith.constant 0 : i32
    %c0_i32_0 = arith.constant 0 : i32
    %c0_i32_1 = arith.constant 0 : i32
    return %c0_i32, %c0_i32_0 : i32, i32
  }
  func.func @transform_4(%arg0: i32) -> (i32, i32) {
    %c0_i32 = arith.constant 0 : i32
    %c0_i32_0 = arith.constant 0 : i32
    %c0_i32_1 = arith.constant 0 : i32
    return %c0_i32, %c0_i32_0 : i32, i32
  }
  func.func @transform_5(%arg0: i32) -> (i32, i32) {
    %c0_i32 = arith.constant 0 : i32
    %c0_i32_0 = arith.constant 0 : i32
    return %arg0, %c0_i32 : i32, i32
  }
}

</mosaic_0001>

<bundles_post_ra>
// kernel: tpu_custom_call.1
= control target key start
LH: loop header
LB: loop body
LE: loop exit
PB: predicated region body
PF: predicated region fallthrough
CT: control target
= control target key end

     0   :  { %s343_s0 = inlined_call_operand.hbm [shape: f32[8,16], index: 0, kind: input, shape index: {}]   ;;  %s344_s1 = inlined_call_operand.hbm [shape: bf16[16,128], index: 1, kind: input, shape index: {}]   ;;  %s345_s2 = inlined_call_operand.vmem [shape: f32[1,128], index: 2, kind: input, shape index: {}]   ;;  %s346_s3 = inlined_call_operand.vmem [shape: f32[1,128], index: 3, kind: input, shape index: {}]   ;;  %s347_s4 = inlined_call_operand.<no memory space> [shape: f32[1,1], index: 4, kind: input, shape index: {}]   ;;  %s348_s5 = inlined_call_operand.hbm [shape: f32[1,8], index: 5, kind: output, shape index: {}]  }
   0x1   :  { %v10_v0 = vstv %s347_s4 }
   0x2   :  { %11 = vst [vmem:[#allocation2] sm:$0x1] %v10_v0 }
   0x3   :  { %12 = vsyncpa [#allocation4], 0 }
   0x4   :  { %13 = vsyncpa [#allocation7], 0 }
   0x5   :  { %14 = vsyncpa [#allocation5], 0  ;;  %s253_s20 = smov [#allocation3]   ;;  %s254_s22 = smov [#allocation6]  }
   0x6   :  { %s21_s21 = sshll.u32 %s253_s20, 4  ;;  %s30_s23 = sshll.u32 %s254_s22, 4  ;;  %s22_s21 = int_to_ptr.vmem [resolvable:$true] %s21_s21  ;;  %s294_s23 = int_to_ptr.vmem [resolvable:$true] %s30_s23 }
   0x7   :  { %s181_s26 = scalar_lea.hbm %s343_s0, 128 }
   0x8   :  { %p182_p0 = scmp.ne.s32.totalorder %s343_s0, %s181_s26  ;;  %p185_p1 = scmp.lt.u32.totalorder %s181_s26, %s343_s0 }
   0xa   :  { %p187_p2 = pnand %p185_p1, %p182_p0 }
   0xc   :  { %190 = shalt.err (!%p187_p2)
}
   0xd   :  { %s191_s30 = scalar_lea.vmem %s22_s21, 128  ;;  %p196_p4 = scmp.lt.s32.totalorder %s22_s21, %s22_s21 }
   0xe   :  { %p192_p3 = scmp.ne.s32.totalorder %s22_s21, %s191_s30  ;;  %p197_p5 = scmp.lt.s32.totalorder %s191_s30, %s191_s30 }
  0x10   :  { %p198_p6 = por %p197_p5, %p196_p4 }
  0x12   :  { %p199_p7 = pnand %p198_p6, %p192_p3 }
  0x14   :  { %202 = shalt.err (!%p199_p7)
}
  0x15   :  { %24 = dma.hbm_to_vmem [thread:$0]  %s343_s0, 128, %s22_s21, [#allocation4]  }
  0x16   :  { %s203_s10 = scalar_lea.hbm %s344_s1, 128 }
  0x17   :  { %p204_p8 = scmp.ne.s32.totalorder %s344_s1, %s203_s10  ;;  %p207_p9 = scmp.lt.u32.totalorder %s203_s10, %s344_s1 }
  0x19   :  { %p209_p10 = pnand %p207_p9, %p204_p8 }
  0x1b   :  { %212 = shalt.err (!%p209_p10)
}
  0x1c   :  { %s213_s15 = scalar_lea.vmem %s294_s23, 128  ;;  %p218_p12 = scmp.lt.s32.totalorder %s294_s23, %s294_s23 }
  0x1d   :  { %p214_p11 = scmp.ne.s32.totalorder %s294_s23, %s213_s15  ;;  %p219_p13 = scmp.lt.s32.totalorder %s213_s15, %s213_s15 }
  0x1f   :  { %p220_p0 = por %p219_p13, %p218_p12 }
  0x21   :  { %p221_p1 = pnand %p220_p0, %p214_p11 }
  0x23   :  { %224 = shalt.err (!%p221_p1)
}
  0x24   :  { %s255_s0 = smov 64   ;;  %s256_s16 = smov 4  }
  0x25   :  { %36 = dma.hbm_to_vmem [thread:$0]  %s344_s1, 128, %s294_s23, [#allocation7], %s255_s0, %s255_s0, %s256_s16  }
  0x26   :  { %247 = dma.done.wait [#allocation4], 128  }
  0x27   :  { %248 = vsyncadd [#allocation4], 4294967168 }
  0x28   :  { %249 = dma.done.wait [#allocation7], 128  }
  0x29   :  { %250 = vsyncadd [#allocation7], 4294967168  ;;  %v257_v1 = vmov 0.0   ;;  %vm258_vm0 = vmmov 0   ;;  %v180_v2 = vld [vmem:[#allocation6] sm:$0xff]   ;;  %v50_v3 = vld [vmem:[#allocation3] sm:$0xff]  ;;  %v128_v16 = vlaneseq }
  0x2a   :  { %165 = vmatprep.subr.bf16.mxu0 %v257_v1  ;;  %167 = vmatprep.mubr.msk.bf16.mxu0 %vm258_vm0, %v257_v1  ;;  %v54_v4 = vpack.c.bf16 %v50_v3, %v50_v3  ;;  %vm67_vm1 = vcmask 130048   ;;  %v259_v5 = vmov 0   ;;  %v159_v6 = vld [vmem:[%s345_s2] ss:$0 sm:$0xff]  ;;  %s260_s2 = smov [#allocation8]   ;;  %vm141_vm2 = vcmask 57344  }
  0x2b   :  { %166 = vmatpush3.bf16.msra.mxu0 %v180_v2  ;;  %179 = vset.pattern.permute.xlu0 %v259_v5  ;;  %v162_v11 = vld [vmem:[%s346_s3] ss:$0 sm:$0xff]  ;;  %v129_v17 = vshrl.u32 %v128_v16, 7  ;;  %v135_v20 = vand.u32 127, %v128_v16  ;;  %s149_s22 = sshll.u32 %s260_s2, 4  ;;  %s150_s22 = int_to_ptr.vmem [resolvable:$true] %s149_s22 }
  0x2c   :  { %v113_v15 = vld [vmem:[#allocation2] sm:$0x1]  ;;  %s225_s3 = scalar_lea.vmem %s150_s22, 16  ;;  %s229_s23 = scalar_lea.vmem %s150_s22, 32 }
  0x2d   :  { %v130_v19 = vsub.s32 0, %v129_v17  ;;  %v138_v22 = vsub.s32 %v135_v20, %v129_v17  ;;  %p226_p2 = scmp.ne.s32.totalorder %s150_s22, %s225_s3  ;;  %p230_p3 = scmp.lt.s32.totalorder %s150_s22, %s150_s22 }
  0x2e   :  { %168 = vmatmul.mubr.msk.bf16.vlgmr.msra.gmra.mrb[0].mxu0 %vm67_vm1, %v54_v4  ;;  %p231_p4 = scmp.lt.s32.totalorder %s229_s23, %s225_s3 }
  0x30   :  { %p232_p5 = por %p231_p4, %p230_p3 }
  0x32   :  { %p233_p6 = pnand %p232_p5, %p226_p2 }
 0x101   :  { %v105_v7 = vpop.f32.mrb[0].mxu0 }
 0x102   :  { %v106_v8 = vadd.f32 %v159_v6, %v105_v7  ;;  %v169_v9 = vpop.f32.mrb[1].mxu0 }
 0x103   :  { %v108_v10 = vpop.f32.mrb[2].mxu0 }
 0x104   :  { %v111_v12 = vmax.f32 %v106_v8, 0.0  ;;  %v170_v13 = vpop.f32.mrb[3].mxu0 }
 0x106   :  { %v120_v14 = vmul.f32 %v162_v11, %v111_v12 }
 0x108   :  { %121 = vadd.xlane.f32.xlu0 %v120_v14 }
 0x11e   :  { %125 = vperm.xlu0 %179, %v113_v15  }
 0x195   :  { %v122_v18 = vpop.xlane.xlu0 %121 }
 0x19d   :  { %v126_v21 = vpop.permute.xlu0 %125 }
 0x19e   :  { %v131_v23 = vrot.slane %v126_v21, %v130_v19 }
 0x1a0   :  { %v132_v24 = vadd.f32 %v131_v23, %v122_v18 }
 0x1a2   :  { %v139_v25 = vrot.slane %v132_v24, %v138_v22 }
 0x1a4   :  { %142 = vst.msk [vmem:[#allocation8] sm:$0x1] %vm141_vm2, %v139_v25 }
 0x1a5   :  { %236 = shalt.err (!%p233_p6)
}
 0x1a6   :  { %s237_s26 = scalar_lea.hbm %s348_s5, 16 }
 0x1a7   :  { %p238_p7 = scmp.ne.s32.totalorder %s348_s5, %s237_s26  ;;  %p241_p8 = scmp.lt.u32.totalorder %s237_s26, %s348_s5 }
 0x1a9   :  { %p243_p9 = pnand %p241_p8, %p238_p7 }
 0x1ab   :  { %246 = shalt.err (!%p243_p9)
}
 0x1ac   :  { %152 = dma.vmem_to_hbm [thread:$0]  %s150_s22, 16, %s348_s5, [#allocation5]  }
 0x1ad   :  { %251 = dma.done.wait [#allocation5], 16  }
 0x1ae   :  { %252 = vsyncadd [#allocation5], 4294967280 }
 0x1af   :  { %156 = vsyncpa [#allocation4], 1 }
 0x1b0   :  { %157 = vsyncpa [#allocation7], 1 }
 0x1b1   :  { %158 = vsyncpa [#allocation5], 1 }

</bundles_post_ra>
